<compile_context>
chip_gen: v5e
topology: v5e:2x2
jax: 0.10.0
libtpu: 0.0.40
codegen_flags: <defaults>
</compile_context>

<pallas_src>
import functools

import jax
import jax.numpy as jnp
from jax.experimental import pallas as pl
from jax.experimental.pallas import tpu as pltpu

BN_EPS = 1e-5
C = 128            # padded channel width (lane-dense)
NUM_LAYERS = 3
NUM_CLASSES = 10

_VMEM_SOFT_CAP = 40 * 1024 * 1024   # conservative: leaves headroom on v7x (64 MiB/TC)


# ----------------------------- Pallas kernel -------------------------------

def fused_gcn_kernel(a_ref, x_hbm, p_hbm, w_ref, gamma_ref, beta_ref,
                     wfc_ref, bfc_ref, o_ref,
                     h_act, h_pre, sum_sc, sumsq_sc, p_vmem, p_sem,
                     *, tile_rows, a_resident):
    l = pl.program_id(0)                       # layer index
    r = pl.program_id(1)                       # row-tile index
    last_l = pl.num_programs(0) - 1
    last_r = pl.num_programs(1) - 1

    tm = tile_rows
    n_nodes = h_act.shape[0]
    row = pl.multiple_of(r * tm, tm)

    # One-time load of padded input features into the resident activation buf.
    @pl.when((l == 0) & (r == 0))
    def _():
        pltpu.sync_copy(x_hbm, h_act)

    # Reset BN statistics at the start of every layer.
    @pl.when(r == 0)
    def _():
        sum_sc[...] = jnp.zeros_like(sum_sc)
        sumsq_sc[...] = jnp.zeros_like(sumsq_sc)

    # Prefetch the pooling matrix while the last layer's matmuls run.
    @pl.when((l == last_l) & (r == 0))
    def _():
        pltpu.make_async_copy(p_hbm, p_vmem, p_sem.at[0]).start()

    # ---- aggregate + transform this row tile (bf16 MXU, f32 accumulate) ----
    if a_resident:
        a_tile = a_ref[pl.ds(row, tm), :]      # A is VMEM-resident across layers
    else:
        a_tile = a_ref[...]                    # streamed (tm, N) row tile
    ah = jnp.dot(a_tile, h_act[...], preferred_element_type=jnp.float32)
    pre = jnp.dot(ah.astype(jnp.bfloat16), w_ref[0],
                  preferred_element_type=jnp.float32)          # (tm, C) f32
    h_pre[r] = pre.astype(h_pre.dtype)
    # NOTE: single-pass sum/sumsq variance can cancel for huge N with large
    # channel means; acceptable at this model's scale (see reference check).
    sum_sc[...] += jnp.sum(pre, axis=0, keepdims=True)
    sumsq_sc[...] += jnp.sum(pre * pre, axis=0, keepdims=True)

    # ---- after the last row tile: finalize BN, normalize + ReLU full H ----
    # Padded channels have pre == 0 everywhere -> mean = var = 0; gamma/beta
    # are zero-padded so scale = shift = 0 and the padded lanes stay zero.
    @pl.when(r == last_r)
    def _():
        inv_n = jnp.float32(1.0 / n_nodes)
        mean = sum_sc[...] * inv_n
        var = jnp.maximum(sumsq_sc[...] * inv_n - mean * mean, 0.0)
        inv_std = jax.lax.rsqrt(var + BN_EPS)
        scale = gamma_ref[0] * inv_std                          # (1, C)
        shift = beta_ref[0] - mean * scale                      # (1, C)
        pre_all = h_pre[...].astype(jnp.float32)                # (r_tiles, tm, C)
        y = jnp.maximum(pre_all * scale + shift, 0.0)
        h_act[...] = y.reshape(n_nodes, C).astype(h_act.dtype)

    # ---- epilogue: global mean pool + final Linear on the last grid step ----
    @pl.when((l == last_l) & (r == last_r))
    def _():
        pltpu.make_async_copy(p_hbm, p_vmem, p_sem.at[0]).wait()
        pooled = jnp.dot(p_vmem[...], h_act[...],
                         preferred_element_type=jnp.float32)    # (G, C) f32
        o_ref[...] = (jnp.dot(pooled.astype(jnp.bfloat16), wfc_ref[...],
                              preferred_element_type=jnp.float32)
                      + bfc_ref[...])


# ------------------------------- wrappers -----------------------------------

def _round_up(v, m):
    return (v + m - 1) // m * m


def _estimate_vmem_bytes(n, num_graphs, tm, a_resident):
    """Approximate VMEM footprint (scratch + double-buffered BlockSpec inputs)."""
    lane = lambda v: max(_round_up(v, 128), 128)
    sub16 = lambda v: max(_round_up(v, 16), 16)
    sub8 = lambda v: max(_round_up(v, 8), 8)
    bf16, f32 = 2, 4
    total = 0
    total += 2 * sub16(n) * lane(C) * bf16                 # h_act + h_pre
    total += 2 * sub8(1) * lane(C) * f32                   # BN sum / sumsq
    total += sub16(num_graphs) * lane(n) * bf16            # pooling-matrix buffer
    a_rows = n if a_resident else tm
    total += 2 * sub16(a_rows) * lane(n) * bf16            # A tile(s), 2 buffers
    total += 2 * sub16(C) * lane(C) * bf16                 # W (per-layer slice)
    total += 2 * 2 * sub8(1) * lane(C) * f32               # gamma + beta
    total += 2 * sub16(C) * lane(C) * bf16                 # W_fc
    total += 2 * sub8(1) * lane(C) * f32                   # b_fc
    total += sub8(num_graphs) * lane(C) * f32              # output block
    return total


def _pick_tiling(n, num_graphs, tile_rows=None, force_stream_a=False):
    a_resident = (not force_stream_a) and (
        _estimate_vmem_bytes(n, num_graphs, n, True) <= _VMEM_SOFT_CAP)
    if tile_rows is None:
        if a_resident and n <= 1024:
            tile_rows = n
        else:
            tile_rows = n                                  # fallback: single tile
            for tm in (1024, 512, 256, 128, 64, 32, 16):
                if tm <= n and n % tm == 0 and (
                        a_resident or
                        _estimate_vmem_bytes(n, num_graphs, tm, False)
                        <= _VMEM_SOFT_CAP):
                    tile_rows = tm
                    break
    assert n % tile_rows == 0, "row tile must divide the node count"
    assert tile_rows == n or tile_rows % 16 == 0, \
        "row tile must be a multiple of 16 (bf16 sublane packing)"
    return tile_rows, a_resident


def build_norm_adj(edge_index, num_nodes):
    """Dense D^{-1/2} (A + I) D^{-1/2}, matching PyG GCNConv normalization."""
    src, dst = edge_index[0], edge_index[1]
    loop = jnp.arange(num_nodes, dtype=src.dtype)
    src = jnp.concatenate([src, loop])
    dst = jnp.concatenate([dst, loop])
    adj = jnp.zeros((num_nodes, num_nodes), jnp.float32).at[dst, src].add(1.0)
    deg = adj.sum(axis=1)
    dinv = jnp.where(deg > 0, jax.lax.rsqrt(deg), 0.0)
    return dinv[:, None] * adj * dinv[None, :]


def build_pool_matrix(batch, num_graphs, num_nodes):
    onehot = (batch[None, :] == jnp.arange(num_graphs)[:, None]).astype(jnp.float32)
    counts = onehot.sum(axis=1, keepdims=True)
    return onehot / jnp.maximum(counts, 1.0)


def pack_params(params):
    """Pad/stack torch-layout params into lane-dense (…,128) blocks once.

    GCNConv biases b1..b3 are intentionally dropped: training-mode BatchNorm
    subtracts the per-channel mean, which exactly cancels a constant bias.
    gamma/beta/W are zero-padded so the padded BN lanes stay exactly zero.
    """
    dims = [(3, 16), (16, 32), (32, 64)]
    w = jnp.zeros((NUM_LAYERS, C, C), jnp.float32)
    gamma = jnp.zeros((NUM_LAYERS, 1, C), jnp.float32)
    beta = jnp.zeros((NUM_LAYERS, 1, C), jnp.float32)
    for i, (fi, fo) in enumerate(dims):
        w = w.at[i, :fi, :fo].set(params[f"w{i + 1}"])
        gamma = gamma.at[i, 0, :fo].set(params[f"g{i + 1}"])
        beta = beta.at[i, 0, :fo].set(params[f"be{i + 1}"])
    w_fc = jnp.zeros((C, C), jnp.float32).at[:64, :NUM_CLASSES].set(params["w_fc"].T)
    b_fc = jnp.zeros((1, C), jnp.float32).at[0, :NUM_CLASSES].set(params["b_fc"])
    return {"w": w.astype(jnp.bfloat16), "gamma": gamma, "beta": beta,
            "w_fc": w_fc.astype(jnp.bfloat16), "b_fc": b_fc}


def gcn_forward(x, edge_index, batch, packed, num_graphs, *,
                tile_rows=None, force_stream_a=False):
    n, f_in = x.shape
    a_hat = build_norm_adj(edge_index, n).astype(jnp.bfloat16)
    p_mat = build_pool_matrix(batch, num_graphs, n).astype(jnp.bfloat16)
    x_pad = jnp.zeros((n, C), jnp.bfloat16).at[:, :f_in].set(x.astype(jnp.bfloat16))

    tm, a_resident = _pick_tiling(n, num_graphs, tile_rows, force_stream_a)
    r_tiles = n // tm
    grid = (NUM_LAYERS, r_tiles)

    if a_resident:
        # Small-graph fast path: A is DMA'd once and reused across all layers.
        a_spec = pl.BlockSpec((n, n), lambda l, r: (0, 0))
    else:
        a_spec = pl.BlockSpec((tm, n), lambda l, r: (r, 0))

    est = _estimate_vmem_bytes(n, num_graphs, tm, a_resident)
    vmem_limit = int(min(max(2 * est + (4 << 20), 32 << 20), 112 << 20))

    kernel = functools.partial(fused_gcn_kernel,
                               tile_rows=tm, a_resident=a_resident)

    out = pl.pallas_call(
        kernel,
        out_shape=jax.ShapeDtypeStruct((num_graphs, C), jnp.float32),
        grid_spec=pltpu.PrefetchScalarGridSpec(
            num_scalar_prefetch=0,
            grid=grid,
            in_specs=[
                a_spec,                                             # A_hat (bf16)
                pl.BlockSpec(memory_space=pl.ANY),                  # padded X (HBM)
                pl.BlockSpec(memory_space=pl.ANY),                  # pooling matrix (HBM)
                pl.BlockSpec((1, C, C), lambda l, r: (l, 0, 0)),    # stacked W (bf16)
                pl.BlockSpec((1, 1, C), lambda l, r: (l, 0, 0)),    # gamma (f32)
                pl.BlockSpec((1, 1, C), lambda l, r: (l, 0, 0)),    # beta (f32)
                pl.BlockSpec((C, C), lambda l, r: (0, 0)),          # W_fc (bf16, pre-T)
                pl.BlockSpec((1, C), lambda l, r: (0, 0)),          # b_fc (f32)
            ],
            out_specs=pl.BlockSpec((num_graphs, C), lambda l, r: (0, 0)),
            scratch_shapes=[
                pltpu.VMEM((n, C), jnp.bfloat16),            # resident activations H
                pltpu.VMEM((r_tiles, tm, C), jnp.bfloat16),  # current-layer pre-acts
                pltpu.VMEM((1, C), jnp.float32),             # BN channel sums
                pltpu.VMEM((1, C), jnp.float32),             # BN channel sum of squares
                pltpu.VMEM((num_graphs, n), jnp.bfloat16),   # pooling matrix buffer
                pltpu.SemaphoreType.DMA((1,)),               # P prefetch semaphore
            ]),
        compiler_params=pltpu.CompilerParams(
            # Cross-row-tile BN stats + layer ordering force a sequential grid.
            dimension_semantics=("arbitrary", "arbitrary"),
            vmem_limit_bytes=vmem_limit),
    )(a_hat, x_pad, p_mat, packed["w"], packed["gamma"], packed["beta"],
      packed["w_fc"], packed["b_fc"])
    return out[:, :NUM_CLASSES]


def gcn_reference(x, edge_index, batch, params, num_graphs):
    """Pure-JAX f32 reference matching the torch module semantics (train BN)."""
    n = x.shape[0]
    a = build_norm_adj(edge_index, n)
    p = build_pool_matrix(batch, num_graphs, n)
    h = x
    for i in range(1, 4):
        h = a @ (h @ params[f"w{i}"]) + params[f"b{i}"]
        mean = h.mean(axis=0, keepdims=True)
        var = ((h - mean) ** 2).mean(axis=0, keepdims=True)   # biased (train BN)
        h = (h - mean) * jax.lax.rsqrt(var + BN_EPS)
        h = h * params[f"g{i}"] + params[f"be{i}"]
        h = jnp.maximum(h, 0.0)
    return p @ h @ params["w_fc"].T + params["b_fc"]


def init_params(key):
    ks = jax.random.split(key, 14)

    def lin(k, fin, fout):
        return (jax.random.normal(k, (fin, fout), jnp.float32) *
                (1.0 / jnp.sqrt(jnp.float32(fin))))

    def vec(k, d, scale=0.1):
        return scale * jax.random.normal(k, (d,), jnp.float32)

    return {
        "w1": lin(ks[0], 3, 16),  "b1": vec(ks[1], 16),
        "w2": lin(ks[2], 16, 32), "b2": vec(ks[3], 32),
        "w3": lin(ks[4], 32, 64), "b3": vec(ks[5], 64),
        "g1": 1.0 + vec(ks[6], 16),  "be1": vec(ks[7], 16),
        "g2": 1.0 + vec(ks[8], 32),  "be2": vec(ks[9], 32),
        "g3": 1.0 + vec(ks[10], 64), "be3": vec(ks[11], 64),
        "w_fc": (jax.random.normal(ks[12], (10, 64), jnp.float32) *
                 (1.0 / jnp.sqrt(jnp.float32(64)))),
        "b_fc": vec(ks[13], 10),
    }


if __name__ == "__main__":
    key = jax.random.PRNGKey(0)
    k_x, k_p = jax.random.split(key)

    # Two ring graphs of 16 nodes each, 3 input features per node.
    num_graphs = 2
    nodes_per_graph = 16
    num_nodes = num_graphs * nodes_per_graph

    x = jax.random.normal(k_x, (num_nodes, 3), jnp.float32)

    src_list, dst_list = [], []
    for g in range(num_graphs):
        base = g * nodes_per_graph
        for i in range(nodes_per_graph):
            a = base + i
            b = base + (i + 1) % nodes_per_graph
            src_list += [a, b]
            dst_list += [b, a]
    edge_index = jnp.array([src_list, dst_list], dtype=jnp.int32)
    batch = jnp.repeat(jnp.arange(num_graphs, dtype=jnp.int32), nodes_per_graph)

    params = init_params(k_p)
    packed = pack_params(params)
    ref = gcn_reference(x, edge_index, batch, params, num_graphs)

    # Path 1: small-graph fast path (A VMEM-resident, single row tile/layer).
    out_resident = jax.block_until_ready(
        gcn_forward(x, edge_index, batch, packed, num_graphs))
    # Path 2: streamed/tiled A, exercising cross-tile BN accumulation.
    out_streamed = jax.block_until_ready(
        gcn_forward(x, edge_index, batch, packed, num_graphs,
                    tile_rows=16, force_stream_a=True))

    for out in (out_resident, out_streamed):
        assert out.shape == (num_graphs, NUM_CLASSES)
        assert jnp.all(jnp.isfinite(out))
        assert jnp.allclose(out, ref, atol=1.5e-1, rtol=1.5e-1), \
            float(jnp.max(jnp.abs(out - ref)))
    print("KERNEL_OK")
</pallas_src>

<mosaic_0001>
module attributes {stable_mosaic.version = 11 : i64} {
  func.func @fused_gcn_kernel(%arg0: i32, %arg1: i32, %arg2: memref<32x32xbf16, #tpu.memory_space<vmem>>, %arg3: memref<32x128xbf16, #tpu.memory_space<any>>, %arg4: memref<2x32xbf16, #tpu.memory_space<any>>, %arg5: memref<1x128x128xbf16, #tpu.memory_space<vmem>>, %arg6: memref<1x1x128xf32, #tpu.memory_space<vmem>>, %arg7: memref<1x1x128xf32, #tpu.memory_space<vmem>>, %arg8: memref<128x128xbf16, #tpu.memory_space<vmem>>, %arg9: memref<1x128xf32, #tpu.memory_space<vmem>>, %arg10: memref<2x128xf32, #tpu.memory_space<vmem>>, %arg11: memref<32x128xbf16, #tpu.memory_space<vmem>>, %arg12: memref<1x32x128xbf16, #tpu.memory_space<vmem>>, %arg13: memref<1x128xf32, #tpu.memory_space<vmem>>, %arg14: memref<1x128xf32, #tpu.memory_space<vmem>>, %arg15: memref<2x32xbf16, #tpu.memory_space<vmem>>, %arg16: memref<1x!tpu.dma_semaphore, #tpu.memory_space<semaphore_mem>>) attributes {dimension_semantics = [#tpu.dimension_semantics<arbitrary>, #tpu.dimension_semantics<arbitrary>], iteration_bounds = array<i64: 3, 1>, scalar_prefetch = 0 : i64, scratch_operands = 6 : i64, tpu.core_type = #tpu.core_type<tc>, window_params = [{pipeline_mode = #tpu.pipeline_mode<synchronous>, transform_indices = @transform_0, window_bounds = array<i64: 32, 32>}, {}, {}, {transform_indices = @transform_3, window_bounds = array<i64: 1, 128, 128>}, {transform_indices = @transform_4, window_bounds = array<i64: 1, 1, 128>}, {transform_indices = @transform_5, window_bounds = array<i64: 1, 1, 128>}, {pipeline_mode = #tpu.pipeline_mode<synchronous>, transform_indices = @transform_6, window_bounds = array<i64: 128, 128>}, {pipeline_mode = #tpu.pipeline_mode<synchronous>, transform_indices = @transform_7, window_bounds = array<i64: 1, 128>}, {pipeline_mode = #tpu.pipeline_mode<synchronous>, transform_indices = @transform_8, window_bounds = array<i64: 2, 128>}]} {
    %c32_i32 = arith.constant 32 : i32
    %0 = arith.muli %arg1, %c32_i32 : i32
    %1 = tpu.assume_multiple %0, 32 : i32
    %c0_i32 = arith.constant 0 : i32
    %2 = arith.cmpi eq, %arg0, %c0_i32 : i32
    %c0_i32_0 = arith.constant 0 : i32
    %3 = arith.cmpi eq, %arg1, %c0_i32_0 : i32
    %4 = arith.andi %2, %3 : i1
    %5 = arith.extui %4 : i1 to i32
    %c0_i32_1 = arith.constant 0 : i32
    %6 = arith.cmpi ne, %5, %c0_i32_1 : i32
    scf.if %6 {
      "tpu.region"() ({
        %47 = tpu.sem_alloc : memref<!tpu.dma_semaphore, #tpu.memory_space<semaphore_mem>>
        tpu.enqueue_dma source(%arg3 : memref<32x128xbf16, #tpu.memory_space<any>>) target(%arg11 : memref<32x128xbf16, #tpu.memory_space<vmem>>) target_semaphore(%47 : memref<!tpu.dma_semaphore, #tpu.memory_space<semaphore_mem>>)
        tpu.wait_dma2 semaphore(%47 : memref<!tpu.dma_semaphore, #tpu.memory_space<semaphore_mem>>) src(%arg3 : memref<32x128xbf16, #tpu.memory_space<any>>) dst(%arg11 : memref<32x128xbf16, #tpu.memory_space<vmem>>)
        tpu.yield
      }) : () -> ()
    } else {
    }
    %c0_i32_2 = arith.constant 0 : i32
    %7 = arith.cmpi eq, %arg1, %c0_i32_2 : i32
    %8 = arith.extui %7 : i1 to i32
    %c0_i32_3 = arith.constant 0 : i32
    %9 = arith.cmpi ne, %8, %c0_i32_3 : i32
    scf.if %9 {
      %cst_29 = arith.constant 0.000000e+00 : f32
      %47 = vector.broadcast %cst_29 : f32 to vector<1x128xf32>
      %c0_30 = arith.constant 0 : index
      %c0_31 = arith.constant 0 : index
      %48 = vector.load %arg13[%c0_30, %c0_31] : memref<1x128xf32, #tpu.memory_space<vmem>>, vector<1x128xf32>
      tpu.vector_store %arg13[%c0_30, %c0_31], %47 {strides = array<i32>} : memref<1x128xf32, #tpu.memory_space<vmem>>, vector<1x128xf32>,
      %cst_32 = arith.constant 0.000000e+00 : f32
      %49 = vector.broadcast %cst_32 : f32 to vector<1x128xf32>
      %c0_33 = arith.constant 0 : index
      %c0_34 = arith.constant 0 : index
      %50 = vector.load %arg14[%c0_33, %c0_34] : memref<1x128xf32, #tpu.memory_space<vmem>>, vector<1x128xf32>
      tpu.vector_store %arg14[%c0_33, %c0_34], %49 {strides = array<i32>} : memref<1x128xf32, #tpu.memory_space<vmem>>, vector<1x128xf32>,
    } else {
    }
    %c2_i32 = arith.constant 2 : i32
    %10 = arith.cmpi eq, %arg0, %c2_i32 : i32
    %c0_i32_4 = arith.constant 0 : i32
    %11 = arith.cmpi eq, %arg1, %c0_i32_4 : i32
    %12 = arith.andi %10, %11 : i1
    %13 = arith.extui %12 : i1 to i32
    %c0_i32_5 = arith.constant 0 : i32
    %14 = arith.cmpi ne, %13, %c0_i32_5 : i32
    scf.if %14 {
      %c0_i32_29 = arith.constant 0 : i32
      %47 = tpu.memref_slice %arg16[%c0_i32_29] : memref<1x!tpu.dma_semaphore, #tpu.memory_space<semaphore_mem>> -> memref<1x!tpu.dma_semaphore, #tpu.memory_space<semaphore_mem>>
      %48 = tpu.memref_squeeze %47 : memref<1x!tpu.dma_semaphore, #tpu.memory_space<semaphore_mem>> -> memref<!tpu.dma_semaphore, #tpu.memory_space<semaphore_mem>>
      tpu.enqueue_dma source(%arg4 : memref<2x32xbf16, #tpu.memory_space<any>>) target(%arg15 : memref<2x32xbf16, #tpu.memory_space<vmem>>) target_semaphore(%48 : memref<!tpu.dma_semaphore, #tpu.memory_space<semaphore_mem>>)
    } else {
    }
    %15 = arith.index_cast %1 : i32 to index
    %c0 = arith.constant 0 : index
    %16 = vector.load %arg2[%15, %c0] : memref<32x32xbf16, #tpu.memory_space<vmem>>, vector<32x32xbf16>
    %c0_6 = arith.constant 0 : index
    %c0_7 = arith.constant 0 : index
    %17 = vector.load %arg11[%c0_6, %c0_7] : memref<32x128xbf16, #tpu.memory_space<vmem>>, vector<32x128xbf16>
    %cst = arith.constant dense<0.000000e+00> : vector<32x128xf32>
    %18 = tpu.matmul %16, %17, %cst {dimension_numbers = #tpu.dot_dimension_numbers<[1], [0], [0], [1], [0, 0, 1, 1], [], []>} : vector<32x32xbf16>, vector<32x128xbf16>, vector<32x128xf32> -> vector<32x128xf32>
    %19 = arith.truncf %18 : vector<32x128xf32> to vector<32x128xbf16>
    %c0_8 = arith.constant 0 : index
    %c0_9 = arith.constant 0 : index
    %c0_10 = arith.constant 0 : index
    %20 = vector.load %arg5[%c0_8, %c0_9, %c0_10] : memref<1x128x128xbf16, #tpu.memory_space<vmem>>, vector<1x128x128xbf16>
    %21 = vector.shape_cast %20 : vector<1x128x128xbf16> to vector<128x128xbf16>
    %cst_11 = arith.constant dense<0.000000e+00> : vector<32x128xf32>
    %22 = tpu.matmul %19, %21, %cst_11 {dimension_numbers = #tpu.dot_dimension_numbers<[1], [0], [0], [1], [0, 0, 1, 1], [], []>} : vector<32x128xbf16>, vector<128x128xbf16>, vector<32x128xf32> -> vector<32x128xf32>
    %23 = arith.truncf %22 : vector<32x128xf32> to vector<32x128xbf16>
    %24 = arith.index_cast %arg1 : i32 to index
    %c0_12 = arith.constant 0 : index
    %c0_13 = arith.constant 0 : index
    %25 = vector.load %arg12[%24, %c0_12, %c0_13] : memref<1x32x128xbf16, #tpu.memory_space<vmem>>, vector<1x32x128xbf16>
    %26 = vector.shape_cast %25 : vector<1x32x128xbf16> to vector<32x128xbf16>
    %27 = vector.shape_cast %23 : vector<32x128xbf16> to vector<1x32x128xbf16>
    tpu.vector_store %arg12[%24, %c0_12, %c0_13], %27 {strides = array<i32>} : memref<1x32x128xbf16, #tpu.memory_space<vmem>>, vector<1x32x128xbf16>,
    %c0_14 = arith.constant 0 : index
    %c0_15 = arith.constant 0 : index
    %28 = vector.load %arg13[%c0_14, %c0_15] : memref<1x128xf32, #tpu.memory_space<vmem>>, vector<1x128xf32>
    %cst_16 = arith.constant dense<0.000000e+00> : vector<128xf32>
    %29 = vector.multi_reduction <add>, %22, %cst_16 [0] : vector<32x128xf32> to vector<128xf32>
    %30 = vector.shape_cast %29 : vector<128xf32> to vector<1x128xf32>
    %31 = arith.addf %28, %30 : vector<1x128xf32>
    %c0_17 = arith.constant 0 : index
    %c0_18 = arith.constant 0 : index
    %32 = vector.load %arg13[%c0_17, %c0_18] : memref<1x128xf32, #tpu.memory_space<vmem>>, vector<1x128xf32>
    tpu.vector_store %arg13[%c0_17, %c0_18], %31 {strides = array<i32>} : memref<1x128xf32, #tpu.memory_space<vmem>>, vector<1x128xf32>,
    %c0_19 = arith.constant 0 : index
    %c0_20 = arith.constant 0 : index
    %33 = vector.load %arg14[%c0_19, %c0_20] : memref<1x128xf32, #tpu.memory_space<vmem>>, vector<1x128xf32>
    %34 = arith.mulf %22, %22 : vector<32x128xf32>
    %cst_21 = arith.constant dense<0.000000e+00> : vector<128xf32>
    %35 = vector.multi_reduction <add>, %34, %cst_21 [0] : vector<32x128xf32> to vector<128xf32>
    %36 = vector.shape_cast %35 : vector<128xf32> to vector<1x128xf32>
    %37 = arith.addf %33, %36 : vector<1x128xf32>
    %c0_22 = arith.constant 0 : index
    %c0_23 = arith.constant 0 : index
    %38 = vector.load %arg14[%c0_22, %c0_23] : memref<1x128xf32, #tpu.memory_space<vmem>>, vector<1x128xf32>
    tpu.vector_store %arg14[%c0_22, %c0_23], %37 {strides = array<i32>} : memref<1x128xf32, #tpu.memory_space<vmem>>, vector<1x128xf32>,
    %c0_i32_24 = arith.constant 0 : i32
    %39 = arith.cmpi eq, %arg1, %c0_i32_24 : i32
    %40 = arith.extui %39 : i1 to i32
    %c0_i32_25 = arith.constant 0 : i32
    %41 = arith.cmpi ne, %40, %c0_i32_25 : i32
    scf.if %41 {
      %c0_29 = arith.constant 0 : index
      %c0_30 = arith.constant 0 : index
      %47 = vector.load %arg13[%c0_29, %c0_30] : memref<1x128xf32, #tpu.memory_space<vmem>>, vector<1x128xf32>
      %cst_31 = arith.constant 3.125000e-02 : f32
      %48 = vector.broadcast %cst_31 : f32 to vector<1x128xf32>
      %49 = arith.mulf %47, %48 : vector<1x128xf32>
      %c0_32 = arith.constant 0 : index
      %c0_33 = arith.constant 0 : index
      %50 = vector.load %arg14[%c0_32, %c0_33] : memref<1x128xf32, #tpu.memory_space<vmem>>, vector<1x128xf32>
      %cst_34 = arith.constant 3.125000e-02 : f32
      %51 = vector.broadcast %cst_34 : f32 to vector<1x128xf32>
      %52 = arith.mulf %50, %51 : vector<1x128xf32>
      %53 = arith.mulf %49, %49 : vector<1x128xf32>
      %54 = arith.subf %52, %53 : vector<1x128xf32>
      %cst_35 = arith.constant 0.000000e+00 : f32
      %55 = vector.broadcast %cst_35 : f32 to vector<1x128xf32>
      %56 = arith.maximumf %54, %55 : vector<1x128xf32>
      %cst_36 = arith.constant 9.99999974E-6 : f32
      %57 = vector.broadcast %cst_36 : f32 to vector<1x128xf32>
      %58 = arith.addf %56, %57 : vector<1x128xf32>
      %59 = math.rsqrt %58 : vector<1x128xf32>
      %c0_37 = arith.constant 0 : index
      %c0_38 = arith.constant 0 : index
      %c0_39 = arith.constant 0 : index
      %60 = vector.load %arg6[%c0_37, %c0_38, %c0_39] : memref<1x1x128xf32, #tpu.memory_space<vmem>>, vector<1x1x128xf32>
      %61 = vector.shape_cast %60 : vector<1x1x128xf32> to vector<1x128xf32>
      %62 = arith.mulf %61, %59 : vector<1x128xf32>
      %c0_40 = arith.constant 0 : index
      %c0_41 = arith.constant 0 : index
      %c0_42 = arith.constant 0 : index
      %63 = vector.load %arg7[%c0_40, %c0_41, %c0_42] : memref<1x1x128xf32, #tpu.memory_space<vmem>>, vector<1x1x128xf32>
      %64 = vector.shape_cast %63 : vector<1x1x128xf32> to vector<1x128xf32>
      %65 = arith.mulf %49, %62 : vector<1x128xf32>
      %66 = arith.subf %64, %65 : vector<1x128xf32>
      %c0_43 = arith.constant 0 : index
      %c0_44 = arith.constant 0 : index
      %c0_45 = arith.constant 0 : index
      %67 = vector.load %arg12[%c0_43, %c0_44, %c0_45] : memref<1x32x128xbf16, #tpu.memory_space<vmem>>, vector<1x32x128xbf16>
      %68 = arith.extf %67 : vector<1x32x128xbf16> to vector<1x32x128xf32>
      %69 = vector.shape_cast %62 : vector<1x128xf32> to vector<1x1x128xf32>
      %70 = vector.broadcast %69 : vector<1x1x128xf32> to vector<1x32x128xf32>
      %71 = arith.mulf %68, %70 : vector<1x32x128xf32>
      %72 = vector.shape_cast %66 : vector<1x128xf32> to vector<1x1x128xf32>
      %73 = vector.broadcast %72 : vector<1x1x128xf32> to vector<1x32x128xf32>
      %74 = arith.addf %71, %73 : vector<1x32x128xf32>
      %cst_46 = arith.constant 0.000000e+00 : f32
      %75 = vector.broadcast %cst_46 : f32 to vector<1x32x128xf32>
      %76 = arith.maximumf %74, %75 : vector<1x32x128xf32>
      %77 = vector.shape_cast %76 : vector<1x32x128xf32> to vector<32x128xf32>
      %78 = arith.truncf %77 : vector<32x128xf32> to vector<32x128xbf16>
      %c0_47 = arith.constant 0 : index
      %c0_48 = arith.constant 0 : index
      %79 = vector.load %arg11[%c0_47, %c0_48] : memref<32x128xbf16, #tpu.memory_space<vmem>>, vector<32x128xbf16>
      tpu.vector_store %arg11[%c0_47, %c0_48], %78 {strides = array<i32>} : memref<32x128xbf16, #tpu.memory_space<vmem>>, vector<32x128xbf16>,
    } else {
    }
    %c2_i32_26 = arith.constant 2 : i32
    %42 = arith.cmpi eq, %arg0, %c2_i32_26 : i32
    %c0_i32_27 = arith.constant 0 : i32
    %43 = arith.cmpi eq, %arg1, %c0_i32_27 : i32
    %44 = arith.andi %42, %43 : i1
    %45 = arith.extui %44 : i1 to i32
    %c0_i32_28 = arith.constant 0 : i32
    %46 = arith.cmpi ne, %45, %c0_i32_28 : i32
    scf.if %46 {
      %c0_i32_29 = arith.constant 0 : i32
      %47 = tpu.memref_slice %arg16[%c0_i32_29] : memref<1x!tpu.dma_semaphore, #tpu.memory_space<semaphore_mem>> -> memref<1x!tpu.dma_semaphore, #tpu.memory_space<semaphore_mem>>
      %48 = tpu.memref_squeeze %47 : memref<1x!tpu.dma_semaphore, #tpu.memory_space<semaphore_mem>> -> memref<!tpu.dma_semaphore, #tpu.memory_space<semaphore_mem>>
      tpu.wait_dma2 semaphore(%48 : memref<!tpu.dma_semaphore, #tpu.memory_space<semaphore_mem>>) src(%arg4 : memref<2x32xbf16, #tpu.memory_space<any>>) dst(%arg15 : memref<2x32xbf16, #tpu.memory_space<vmem>>)
      %c0_30 = arith.constant 0 : index
      %c0_31 = arith.constant 0 : index
      %49 = vector.load %arg15[%c0_30, %c0_31] : memref<2x32xbf16, #tpu.memory_space<vmem>>, vector<2x32xbf16>
      %c0_32 = arith.constant 0 : index
      %c0_33 = arith.constant 0 : index
      %50 = vector.load %arg11[%c0_32, %c0_33] : memref<32x128xbf16, #tpu.memory_space<vmem>>, vector<32x128xbf16>
      %cst_34 = arith.constant dense<0.000000e+00> : vector<2x128xf32>
      %51 = tpu.matmul %49, %50, %cst_34 {dimension_numbers = #tpu.dot_dimension_numbers<[1], [0], [0], [1], [0, 0, 1, 1], [], []>} : vector<2x32xbf16>, vector<32x128xbf16>, vector<2x128xf32> -> vector<2x128xf32>
      %52 = arith.truncf %51 : vector<2x128xf32> to vector<2x128xbf16>
      %c0_35 = arith.constant 0 : index
      %c0_36 = arith.constant 0 : index
      %53 = vector.load %arg8[%c0_35, %c0_36] : memref<128x128xbf16, #tpu.memory_space<vmem>>, vector<128x128xbf16>
      %cst_37 = arith.constant dense<0.000000e+00> : vector<2x128xf32>
      %54 = tpu.matmul %52, %53, %cst_37 {dimension_numbers = #tpu.dot_dimension_numbers<[1], [0], [0], [1], [0, 0, 1, 1], [], []>} : vector<2x128xbf16>, vector<128x128xbf16>, vector<2x128xf32> -> vector<2x128xf32>
      %c0_38 = arith.constant 0 : index
      %c0_39 = arith.constant 0 : index
      %55 = vector.load %arg9[%c0_38, %c0_39] : memref<1x128xf32, #tpu.memory_space<vmem>>, vector<1x128xf32>
      %56 = vector.broadcast %55 : vector<1x128xf32> to vector<2x128xf32>
      %57 = arith.addf %54, %56 : vector<2x128xf32>
      %c0_40 = arith.constant 0 : index
      %c0_41 = arith.constant 0 : index
      %58 = vector.load %arg10[%c0_40, %c0_41] : memref<2x128xf32, #tpu.memory_space<vmem>>, vector<2x128xf32>
      tpu.vector_store %arg10[%c0_40, %c0_41], %57 {strides = array<i32>} : memref<2x128xf32, #tpu.memory_space<vmem>>, vector<2x128xf32>,
    } else {
    }
    return
  }
  func.func @transform_0(%arg0: i32, %arg1: i32) -> (i32, i32) {
    %c0_i32 = arith.constant 0 : i32
    %c0_i32_0 = arith.constant 0 : i32
    %c0_i32_1 = arith.constant 0 : i32
    return %c0_i32, %c0_i32_0 : i32, i32
  }
  func.func @transform_3(%arg0: i32, %arg1: i32) -> (i32, i32, i32) {
    %c0_i32 = arith.constant 0 : i32
    %c0_i32_0 = arith.constant 0 : i32
    %c0_i32_1 = arith.constant 0 : i32
    return %arg0, %c0_i32, %c0_i32_0 : i32, i32, i32
  }
  func.func @transform_4(%arg0: i32, %arg1: i32) -> (i32, i32, i32) {
    %c0_i32 = arith.constant 0 : i32
    %c0_i32_0 = arith.constant 0 : i32
    %c0_i32_1 = arith.constant 0 : i32
    return %arg0, %c0_i32, %c0_i32_0 : i32, i32, i32
  }
  func.func @transform_5(%arg0: i32, %arg1: i32) -> (i32, i32, i32) {
    %c0_i32 = arith.constant 0 : i32
    %c0_i32_0 = arith.constant 0 : i32
    %c0_i32_1 = arith.constant 0 : i32
    return %arg0, %c0_i32, %c0_i32_0 : i32, i32, i32
  }
  func.func @transform_6(%arg0: i32, %arg1: i32) -> (i32, i32) {
    %c0_i32 = arith.constant 0 : i32
    %c0_i32_0 = arith.constant 0 : i32
    %c0_i32_1 = arith.constant 0 : i32
    return %c0_i32, %c0_i32_0 : i32, i32
  }
  func.func @transform_7(%arg0: i32, %arg1: i32) -> (i32, i32) {
    %c0_i32 = arith.constant 0 : i32
    %c0_i32_0 = arith.constant 0 : i32
    %c0_i32_1 = arith.constant 0 : i32
    return %c0_i32, %c0_i32_0 : i32, i32
  }
  func.func @transform_8(%arg0: i32, %arg1: i32) -> (i32, i32) {
    %c0_i32 = arith.constant 0 : i32
    %c0_i32_0 = arith.constant 0 : i32
    %c0_i32_1 = arith.constant 0 : i32
    return %c0_i32, %c0_i32_0 : i32, i32
  }
}

</mosaic_0001>

<bundles_post_ra>
// kernel: tpu_custom_call.1
= control target key start
LH: loop header
LB: loop body
LE: loop exit
PB: predicated region body
PF: predicated region fallthrough
CT: control target
= control target key end

     0   :  { %s1669_s0 = inlined_call_operand.hbm [shape: bf16[32,32], index: 0, kind: input, shape index: {}]   ;;  %s1670_s1 = inlined_call_operand.hbm [shape: bf16[32,128], index: 1, kind: input, shape index: {}]   ;;  %s1671_s2 = inlined_call_operand.hbm [shape: bf16[2,32], index: 2, kind: input, shape index: {}]   ;;  %s1672_s3 = inlined_call_operand.hbm [shape: bf16[3,128,128], index: 3, kind: input, shape index: {}]   ;;  %s1673_s4 = inlined_call_operand.vmem [shape: f32[3,1,128], index: 4, kind: input, shape index: {}]   ;;  %s1674_s5 = inlined_call_operand.hbm [shape: f32[3,1,128], index: 5, kind: input, shape index: {}]   ;;  %s1675_s6 = inlined_call_operand.hbm [shape: bf16[128,128], index: 6, kind: input, shape index: {}]   ;;  %s1676_s7 = inlined_call_operand.vmem [shape: f32[1,128], index: 7, kind: input, shape index: {}]   ;;  %s1677_s8 = inlined_call_operand.hbm [shape: f32[2,128], index: 8, kind: output, shape index: {}]  }
   0x1   :  { %1681 = sst [smem:[#allocation33_spill]] %s1669_s0 }
   0x2   :  { %1682 = sst [smem:[#allocation34_spill]] %s1672_s3 }
   0x3   :  { %1683 = sst [smem:[#allocation35_spill]] %s1677_s8 }
   0x4   :  { %13 = vsyncpa [#allocation9], 0 }
   0x5   :  { %14 = vsyncpa [#allocation12], 0 }
   0x6   :  { %16 = vsyncpa [#allocation12 + $0x1], 0 }
   0x7   :  { %17 = vsyncpa [#allocation15], 0 }
   0x8   :  { %18 = vsyncpa [#allocation10], 0  ;;  %s1484_s27 = smov 0   ;;  %s1486_s28 = smov 0  }
   0x9   :  { %s1488_s29 = smov 0   ;;  %s1490_s30 = smov 0  }
   0xa   :  { %s1492_s9 = smov 0   ;;  %s1494_s10 = smov 0  }
   0xb LB: > { %1684 = sst [smem:[#allocation30_spill]] %s1429_s10  ;;  %s36_s11 = sadd.s32 1, %s1425_s9  ;;  %s1429_s10 = sphi %s1494_s10, %s24_s10   ;;  %s1425_s9 = sphi %s1492_s9, %s1702_s9   ;;  %s1421_s30 = sphi %s1490_s30, %s1701_s30   ;;  %s1417_s29 = sphi %s1488_s29, %s1700_s29   ;;  %s1413_s28 = sphi %s1486_s28, %s1699_s28   ;;  %s1409_s27 = sphi %s1484_s27, %s1698_s27  }
   0xc   : > { %s64_s12 = sadd.s32 1, %s1417_s29  ;;  %p38_p0 = scmp.ge.s32.totalorder %s36_s11, 3 }
   0xd   : > { %p71_p1 = scmp.ne.s32.totalorder %s1417_s29, %s1413_s28  ;;  %p72_p2 = scmp.eq.s32.totalorder %s1429_s10, 0 }
   0xe   : > { %s1704_s11 = smov (%p38_p0, %s36_s11), 0  ;;  %p1099_p5 = scmp.lt.s32.totalorder %s1429_s10, 3 }
   0xf   : > { %1685 = sst [smem:[#allocation31_spill]] %s1704_s11  ;;  %p1521_p3 = por %p72_p2, %p71_p1 }
  0x10   : > { %s61_s14 = ssub.s32 %s1425_s9, %s1704_s11  ;;  %s247_s15 = sand.u32 1, %s1429_s10  }
  0x11   : > { %p62_p4 = scmp.eq.s32.totalorder %s61_s14, 0  ;;  %s1678_s16 = sand.u32 1, %s1417_s29  }
  0x12   : > { %s897_s18 = sshll.u32 %s1678_s16, 6  ;;  %s1002_s19 = sshll.u32 %s1425_s9, 6 }
  0x13   : > { %s1531_s17 = scalar_select %p62_p4, %s1417_s29, %s64_s12  }
  0x14   : > { %s1688_s3 = sld [smem:[#allocation34_spill]]  ;;  %s251_s23 = scalar_lea.vmem [#allocation11], %s897_s18 }
  0x15   : > { %1687 = sst [smem:[#allocation32_spill]] %s1531_s17  ;;  %s259_s24 = sshll.u32 %s251_s23, 4  ;;  %s260_s24 = int_to_ptr.vmem [resolvable:$true] %s259_s24 }
  0x16   : > { %p1541_p6 = pnand %p1099_p5, %p1521_p3  ;;  %s1545_s12 = scalar_lea.sflag [#allocation12], %s247_s15 }
  0x17   : > { %s1431_s14 = smov 64   ;;  %s1432_s16 = smov 4  }
  0x18   : > { %s1551_s20 = sadd.s32 4294967295, %s1429_s10   ;;  %p77_p7 = scmp.ne.s32.totalorder %s1413_s28, %s1409_s27 }
  0x19   : > { %p78_p8 = scmp.eq.s32.totalorder %s1551_s20, 0  ;;  %p893_p9 = scmp.ge.s32.totalorder %s1429_s10, 1 }
  0x1a   : > { %s256_s22 = scalar_lea.hbm %s1688_s3, %s1002_s19  ;;  %p203_p10 = scmp.lt.s32.totalorder %s1429_s10, 4 }
  0x1b   : > { %s257_s25 = sshll.u32 %s256_s22, 4  ;;  %p1560_p11 = por %p78_p8, %p77_p7  ;;  %s258_s25 = int_to_ptr.hbm [resolvable:$true] %s257_s25 }
  0x1c   : > { %1093 = dma.hbm_to_vmem [thread:$0]  (!%p1541_p6), %s258_s25, 1024, %s260_s24, %s1545_s12, %s1431_s14, %s1431_s14, %s1432_s16  }
  0x1d   : > { %p1564_p12 = pnand %p893_p9, %p203_p10  ;;  %s1692_s0 = sld [smem:[#allocation33_spill]] }
  0x1e   : > { %s1433_s27 = smov [#allocation8]   ;;  %s228_s25 = sshll.u32 %s1675_s6, 4  ;;  %s229_s25 = int_to_ptr.hbm [resolvable:$true] %s228_s25 }
  0x1f   : > { %p1083_p13 = pneg %p1564_p12  ;;  %s216_s22 = sshll.u32 %s1433_s27, 4  ;;  %s217_s22 = int_to_ptr.vmem [resolvable:$true] %s216_s22 }
  0x20   : > { %s1434_s3 = smov [#allocation14]   ;;  %s281_s11 = scalar_lea.hbm %s1674_s5, %s1425_s9 }
  0x21   : > { %p1084_p0 = pnand %p1083_p13, %p78_p8  ;;  %s230_s18 = sshll.u32 %s1434_s3, 4  ;;  %s231_s18 = int_to_ptr.vmem [resolvable:$true] %s230_s18 }
  0x22   : > { %s283_s27 = sshll.u32 %s281_s11, 4  ;;  %s1693_s17 = sand.u32 1, %s1417_s29   ;;  %s284_s27 = int_to_ptr.hbm [resolvable:$true] %s283_s27 }
  0x23   : > { %s214_s21 = sshll.u32 %s1692_s0, 4  ;;  %s278_s10 = scalar_lea.vmem [#allocation13], %s1693_s17  ;;  %s215_s21 = int_to_ptr.hbm [resolvable:$true] %s214_s21 }
  0x24   : > { %1086 = dma.hbm_to_vmem [thread:$0]  (!%p1084_p0), %s215_s21, 256, %s217_s22, [#allocation9], %s1431_s14, %s1431_s14, %s1432_s16  }
  0x25   : > { %1089 = dma.hbm_to_vmem [thread:$0]  (!%p1084_p0), %s229_s25, 1024, %s231_s18, [#allocation15], %s1431_s14, %s1431_s14, %s1432_s16  }
  0x26   : > { %s285_s8 = sshll.u32 %s278_s10, 4  ;;  %294 = sbr.rel (%p1564_p12) target bundleno = 717 (0x2cd), region = 44  ;;  %s286_s8 = int_to_ptr.vmem [resolvable:$true] %s285_s8 }
  0x27   : > { %1096 = dma.hbm_to_vmem [thread:$0]  (!%p1541_p6), %s284_s27, 16, %s286_s8, %s1545_s12  }
  0x2b   : > { %1388 = dma.done.wait (%p78_p8), [#allocation9], 256  }
  0x2c   : > { %1390 = vsyncadd (%p78_p8), [#allocation9], 4294967040  ;;  %s301_s0 = sand.u32 1, %s1551_s20   ;;  %s303_s3 = sand.u32 1, %s1413_s28  }
  0x2d   : > { %s902_s11 = sshll.u32 %s303_s3, 6  ;;  %s302_s10 = scalar_lea.sflag [#allocation12], %s301_s0 }
  0x2e   : > { %s1595_s16 = scalar_lea.vmem [#allocation11], %s902_s11 }
  0x2f   : > { %1392 = dma.done.wait (%p1560_p11), %s302_s10, 1040  }
  0x30   : > { %1394 = vsyncadd (%p1560_p11), %s302_s10, 4294966256  ;;  %s1601_s8 = scalar_lea.vmem [#allocation13], %s303_s3 }
  0x31   : > { %1396 = dma.done.wait (%p78_p8), [#allocation15], 1024  }
  0x32   : > { %1398 = vsyncadd (%p78_p8), [#allocation15], 4294966272  ;;  %p351_p1 = scmp.lt.s32.totalorder %s1421_s30, 2  ;;  %p356_p2 = scmp.eq.s32.totalorder %s1421_s30, 0 }
  0x34   : > { %s1610_s17 = scalar_select %p351_p1, %s1421_s30, 2 }
  0x35   : > { %361 = sbr.rel (!%p356_p2) target bundleno = 63 (0x3f), region = 64 }
  0x36   : > { %s353_s14 = scalar_lea.vmem %s1673_s4, %s1610_s17 }
  0x3a   : > { %s369_s21 = sshll.u32 %s1670_s1, 4  ;;  %s1435_s22 = smov [#allocation2]   ;;  %s370_s21 = int_to_ptr.hbm [resolvable:$true] %s369_s21 }
  0x3b   : > { %s371_s23 = sshll.u32 %s1435_s22, 4  ;;  %s372_s23 = int_to_ptr.vmem [resolvable:$true] %s371_s23 }
  0x3c   : > { %374 = dma.hbm_to_vmem [thread:$0]  %s370_s21, 256, %s372_s23, [#allocation17] }
  0x3d   : > { %1399 = dma.done.wait [#allocation17], 256 }
  0x3e   : > { %1400 = vsyncadd [#allocation17], 4294967040 }
  0x3f PF: > { %v1008_v0 = vld [vmem:[#allocation2 + $0x8] sm:$0xff]  ;;  %v1016_v1 = vld [vmem:[%s1595_s16 + $0x38] sm:$0xff]  ;;  %v1015_v3 = vld [vmem:[%s1595_s16 + $0x30] sm:$0xff]  ;;  %vm436_vm0 = vcmask 261120   ;;  %p384_p3 = scmp.eq.s32.totalorder %s1421_s30, 2  ;;  %s396_s18 = sshll.u32 %s1671_s2, 4  ;;  %s397_s18 = int_to_ptr.hbm [resolvable:$true] %s396_s18 }
  0x40   : > { %449 = vmatpush.bf16.msra.mxu0 %v1008_v0  ;;  %v1007_v2 = vld [vmem:[#allocation2] sm:$0xff]  ;;  %528 = vmatpush.bf16.msra.mxu1 %v1016_v1  ;;  %v1005_v4 = vld [vmem:[#allocation8] sm:$0xff]  ;;  %v1014_v5 = vld [vmem:[%s1595_s16 + $0x28] sm:$0xff]  ;;  %s1436_s19 = smov [#allocation6]   ;;  %v1437_v18 = vmov 0.0  }
  0x41   : > { %1058 = vmatpush.bf16.msra.mxu2 %v1016_v1  ;;  %v1013_v6 = vld [vmem:[%s1595_s16 + $0x20] sm:$0xff]  ;;  %v1012_v7 = vld [vmem:[%s1595_s16 + $0x18] sm:$0xff]  ;;  %v1011_v9 = vld [vmem:[%s1595_s16 + $0x10] sm:$0xff]  ;;  %s398_s27 = sshll.u32 %s1436_s19, 4  ;;  %382 = vst [vmem:[#allocation4] sm:$0x1] %v1437_v18  ;;  %s399_s27 = int_to_ptr.vmem [resolvable:$true] %s398_s27 }
  0x42   : > { %v1006_v8 = vld [vmem:[#allocation8 + $0x8] sm:$0xff]  ;;  %v1010_v10 = vld [vmem:[%s1595_s16 + $0x8] sm:$0xff]  ;;  %v1009_v11 = vld [vmem:[%s1595_s16] sm:$0xff]  ;;  %1078 = dma.hbm_to_vmem [thread:$0]  (%p384_p3), %s397_s18, 16, %s399_s27, [#allocation7] }
  0x43   : > { %383 = vst [vmem:[#allocation5] sm:$0x1] %v1437_v18  ;;  %v607_v63 = vld [vmem:[%s353_s14] sm:$0x1] }
  0x44   : > { %450 = vmatpush.bf16.msra.mxu0 %v1007_v2  ;;  %529 = vmatpush.bf16.msra.mxu1 %v1015_v3 }
  0x45   : > { %1059 = vmatpush.bf16.msra.mxu2 %v1015_v3 }
  0x47   : > { %922 = vmatmul.msk.bf16.vlgmr.msra.gmra.mxu0 %vm436_vm0, %v1005_v4  ;;  %v609_v4 = vld [vmem:[%s1601_s8] sm:$0x1] }
  0x48   : > { %530 = vmatpush.bf16.msra.mxu1 %v1014_v5  ;;  %v558_v42 = vld [vmem:[#allocation4] sm:$0x1] }
  0x49   : > { %1060 = vmatpush.bf16.msra.mxu2 %v1014_v5 }
  0x4a   : > { %v570_v45 = vld [vmem:[#allocation5] sm:$0x1] }
  0x4c   : > { %531 = vmatpush.bf16.msra.mxu1 %v1013_v6 }
  0x4d   : > { %1061 = vmatpush.bf16.msra.mxu2 %v1013_v6 }
  0x50   : > { %532 = vmatpush.bf16.msra.mxu1 %v1012_v7 }
  0x51   : > { %1062 = vmatpush.bf16.msra.mxu2 %v1012_v7 }
  0x54   : > { %533 = vmatpush.bf16.msra.mxu1 %v1011_v9 }
  0x55   : > { %1063 = vmatpush.bf16.msra.mxu2 %v1011_v9 }
  0x57   : > { %923 = vmatmul.msk.bf16.gmra.mxu0 %vm436_vm0, %v1006_v8 }
  0x58   : > { %534 = vmatpush.bf16.msra.mxu1 %v1010_v10 }
  0x59   : > { %1064 = vmatpush.bf16.msra.mxu2 %v1010_v10 }
  0x5c   : > { %535 = vmatpush.bf16.msra.mxu1 %v1009_v11 }
  0x5d   : > { %1065 = vmatpush.bf16.msra.mxu2 %v1009_v11 }
  0xc4   : > { %v452_v12 = vpop.f32.mrf.mxu0 }
  0xcc   : > { %v454_v13 = vpop.f32.mrf.mxu0 }
  0xcd   : > { %v462_v14 = vpack.c.bf16 %v454_v13, %v452_v12 }
  0xcf   : > { %536 = vmatmul.bf16.vlgmr.msra.gmra.mxu1 %v462_v14 }
  0xd4   : > { %v457_v15 = vpop.f32.mrf.mxu0 }
  0xdc   : > { %v459_v16 = vpop.f32.mrf.mxu0 }
  0xdd   : > { %v463_v17 = vpack.c.bf16 %v459_v16, %v457_v15 }
  0xdf   : > { %541 = vmatmul.bf16.vlgmr.msra.gmra.mxu2 %v463_v17 }
 0x14c   : > { %v537_v19 = vpop.f32.mrf.mxu1 }
 0x14d   : > { %v571_v23 = vmul.f32 %v537_v19, %v537_v19 }
 0x154   : > { %v539_v20 = vpop.f32.mrf.mxu1 }
 0x155   : > { %v572_v22 = vmul.f32 %v539_v20, %v539_v20  ;;  %v559_v24 = vadd.f32 %v539_v20, %v537_v19  ;;  %v1030_v0 = vpack.c.bf16 %v539_v20, %v537_v19 }
 0x157   : > { %v575_v26 = vadd.f32 %v572_v22, %v571_v23  ;;  %v1039_v7 = vunpack.c.l.bf16 %v1030_v0  ;;  %v1040_v8 = vunpack.c.h.bf16 %v1030_v0 }
 0x162   : > { %v542_v21 = vpop.f32.mrf.mxu2 }
 0x163   : > { %v573_v25 = vmul.f32 %v542_v21, %v542_v21  ;;  %v560_v27 = vadd.f32 %v559_v24, %v542_v21 }
 0x165   : > { %v576_v29 = vadd.f32 %v575_v26, %v573_v25 }
 0x16a   : > { %v544_v28 = vpop.f32.mrf.mxu2 }
 0x16b   : > { %v561_v30 = vadd.f32 %v560_v27, %v544_v28  ;;  %v574_v31 = vmul.f32 %v544_v28, %v544_v28  ;;  %v1035_v2 = vpack.c.bf16 %v544_v28, %v542_v21 }
 0x16d   : > { %v562_v32 = vrot.slane %v561_v30, 4  ;;  %v577_v33 = vadd.f32 %v576_v29, %v574_v31  ;;  %v1043_v10 = vunpack.c.l.bf16 %v1035_v2  ;;  %v1044_v11 = vunpack.c.h.bf16 %v1035_v2 }
 0x16f   : > { %v563_v34 = vadd.f32 %v562_v32, %v561_v30  ;;  %v578_v35 = vrot.slane %v577_v33, 4 }
 0x171   : > { %v564_v36 = vrot.slane %v563_v34, 2  ;;  %v579_v37 = vadd.f32 %v578_v35, %v577_v33 }
 0x173   : > { %v565_v38 = vadd.f32 %v564_v36, %v563_v34  ;;  %v580_v39 = vrot.slane %v579_v37, 2 }
 0x175   : > { %v566_v40 = vrot.slane %v565_v38, 1  ;;  %v581_v41 = vadd.f32 %v580_v39, %v579_v37 }
 0x177   : > { %v567_v43 = vadd.f32 %v566_v40, %v565_v38  ;;  %v582_v44 = vrot.slane %v581_v41, 1 }
 0x179   : > { %v568_v46 = vadd.f32 %v567_v43, %v558_v42  ;;  %v583_v47 = vadd.f32 %v582_v44, %v581_v41 }
 0x17b   : > { %569 = vst [vmem:[#allocation4] sm:$0x1] %v568_v46  ;;  %v584_v48 = vadd.f32 %v583_v47, %v570_v45 }
 0x17d   : > { %585 = vst [vmem:[#allocation5] sm:$0x1] %v584_v48 }
 0x182   : > { %v589_v49 = vld [vmem:[#allocation4] sm:$0x1] }
 0x183   : > { %v590_v50 = vmul.f32 0.03125, %v589_v49 }
 0x184   : > { %v591_v51 = vld [vmem:[#allocation5] sm:$0x1] }
 0x185   : > { %v592_v52 = vmul.f32 0.03125, %v591_v51  ;;  %v593_v53 = vmul.f32 %v590_v50, %v590_v50 }
 0x187   : > { %v594_v54 = vsub.f32 %v592_v52, %v593_v53 }
 0x189   : > { %v595_v55 = vmax.f32 %v594_v54, 0.0 }
 0x18b   : > { %v596_v56 = vadd.f32 1e-05, %v595_v55 }
 0x18d   : > { %1160 = vrsqrt.f32 %v596_v56  ;;  %vm603_vm2 = vweird.f32 %v596_v56 }
 0x193   : > { %v1161_v57 = vpop.eup %1160 }
 0x194   : > { %v598_v58 = vmul.f32 %v1161_v57, %v596_v56  ;;  %vm604_vm1 = vweird.f32 %v1161_v57 }
 0x195   : > { %vm605_vm3 = vmor %vm603_vm2, %vm604_vm1 }
 0x196   : > { %v599_v59 = vmul.f32 %v1161_v57, %v598_v58 }
 0x198   : > { %v600_v60 = vmul.f32 0.5, %v599_v59 }
 0x19a   : > { %v601_v61 = vsub.f32 1.5, %v600_v60 }
 0x19c   : > { %v602_v62 = vmul.f32 %v1161_v57, %v601_v61 }
 0x19e   : > { %v606_v1 = vsel %vm605_vm3, %v1161_v57, %v602_v62 }
 0x19f   : > { %v608_v3 = vmul.f32 %v607_v63, %v606_v1 }
 0x1a1   : > { %v610_v5 = vmul.f32 %v608_v3, %v590_v50  ;;  %v621_v6 = vperm.slane %v608_v3, 0 }
 0x1a3   : > { %v611_v9 = vsub.f32 %v609_v4, %v610_v5  ;;  %v623_v12 = vmul.f32 %v1039_v7, %v621_v6  ;;  %v624_v13 = vmul.f32 %v1040_v8, %v621_v6  ;;  %v625_v14 = vmul.f32 %v1043_v10, %v621_v6 }
 0x1a4   : > { %v626_v15 = vmul.f32 %v1044_v11, %v621_v6 }
 0x1a5   : > { %v628_v16 = vperm.slane %v611_v9, 0 }
 0x1a7   : > { %v630_v17 = vadd.f32 %v628_v16, %v623_v12  ;;  %v631_v18 = vadd.f32 %v628_v16, %v624_v13  ;;  %v632_v22 = vadd.f32 %v628_v16, %v625_v14  ;;  %v633_v19 = vadd.f32 %v628_v16, %v626_v15 }
 0x1a9   : > { %v634_v20 = vmax.f32 %v630_v17, 0.0  ;;  %v635_v21 = vmax.f32 %v631_v18, 0.0  ;;  %v636_v23 = vmax.f32 %v632_v22, 0.0  ;;  %v637_v24 = vmax.f32 %v633_v19, 0.0 }
 0x1aa   : > { %647 = sbr.rel (!%p384_p3) target bundleno = 707 (0x2c3), region = 89 }
 0x1ab   : > { %v1048_v25 = vpack.c.bf16 %v635_v21, %v634_v20  ;;  %v1053_v26 = vpack.c.bf16 %v637_v24, %v636_v23 }
 0x1ad   : > { %1049 = vst [vmem:[#allocation2] sm:$0xff] %v1048_v25  }
 0x1ae   : > { %1057 = vst [vmem:[#allocation2 + $0x8] sm:$0xff] %v1053_v26  }
 0x1af   : > { %1401 = dma.done.wait [#allocation7], 16 }
 0x1b0   : > { %1402 = vsyncadd [#allocation7], 4294967280  ;;  %v1026_v28 = vld [vmem:[#allocation14 + $0x38] sm:$0xff]  ;;  %v1025_v30 = vld [vmem:[#allocation14 + $0x30] sm:$0xff] }
 0x1b1   : > { %753 = vmatpush.bf16.msra.mxu1 %v1026_v28  ;;  %v651_v31 = vld [vmem:[#allocation6] sm:$0x1]  ;;  %v1023_v33 = vld [vmem:[#allocation14 + $0x20] sm:$0xff]  ;;  %v1022_v34 = vld [vmem:[#allocation14 + $0x18] sm:$0xff] }
 0x1b2   : > { %v1024_v32 = vld [vmem:[#allocation14 + $0x28] sm:$0xff]  ;;  %v1021_v35 = vld [vmem:[#allocation14 + $0x10] sm:$0xff]  ;;  %v1019_v37 = vld [vmem:[#allocation14] sm:$0xff] }
 0x1b3   : > { %v1020_v36 = vld [vmem:[#allocation14 + $0x8] sm:$0xff]  ;;  %v1162_v41 = vld [vmem:[%s1676_s7] ss:$0 sm:$0xff] }
 0x1b4   : > { %v1017_v29 = vld [vmem:[#allocation2] sm:$0xff] }
 0x1b5   : > { %v1018_v27 = vld [vmem:[#allocation2 + $0x8] sm:$0xff]  ;;  %754 = vmatpush.bf16.msra.mxu1 %v1025_v30 }
 0x1b6   : > { %677 = vmatpush.bf16.msra.mxu0 %v1018_v27 }
 0x1b9   : > { %755 = vmatpush.bf16.msra.mxu1 %v1024_v32 }
 0x1ba   : > { %678 = vmatpush.bf16.msra.mxu0 %v1017_v29 }
 0x1bd   : > { %964 = vmatmul.msk.bf16.vlgmr.msra.gmra.mxu0 %vm436_vm0, %v651_v31  ;;  %756 = vmatpush.bf16.msra.mxu1 %v1023_v33 }
 0x1c1   : > { %757 = vmatpush.bf16.msra.mxu1 %v1022_v34 }
 0x1c5   : > { %758 = vmatpush.bf16.msra.mxu1 %v1021_v35 }
 0x1c9   : > { %759 = vmatpush.bf16.msra.mxu1 %v1020_v36 }
 0x1cd   : > { %760 = vmatpush.bf16.msra.mxu1 %v1019_v37 }
 0x23a   : > { %v680_v38 = vpop.f32.mrf.mxu0 }
 0x23b   : > { %v684_v39 = vpack.c.bf16 %v680_v38, %v680_v38 }
 0x23d   : > { %761 = vmatmul.bf16.vlgmr.msra.gmra.mxu1 %v684_v39 }
 0x242   : > { %v682_v40 = vpop.f32.mrf.mxu0 }
 0x2ba   : > { %v762_v42 = vpop.f32.mrf.mxu1 }
 0x2bb   : > { %v763_v43 = vadd.f32 %v1162_v41, %v762_v42 }
 0x2bd   : > { %766 = vst [vmem:[#allocation16] sm:$0x3] %v763_v43 }
 0x2c2   : > { %v764_v44 = vpop.f32.mrf.mxu1 }
 0x2c3 PF: > { %p1102_p4 = scmp.eq.s32.totalorder %s1551_s20, 2  ;;  %s1694_s8 = sld [smem:[#allocation35_spill]] }
 0x2c4   : > { %s1438_s26 = smov [#allocation16]  }
 0x2c5   : > { %s773_s12 = sshll.u32 %s1438_s26, 4  ;;  %s774_s12 = int_to_ptr.vmem [resolvable:$true] %s773_s12 }
 0x2c9   : > { %s775_s17 = sshll.u32 %s1694_s8, 4  ;;  %s776_s17 = int_to_ptr.hbm [resolvable:$true] %s775_s17 }
 0x2ca   : > { %1080 = dma.vmem_to_hbm [thread:$0]  (%p1102_p4), %s774_s12, 32, %s776_s17, [#allocation10]  }
 0x2cb   : > { %1404 = dma.done.wait (%p1102_p4), [#allocation10], 32  }
 0x2cc   : > { %1406 = vsyncadd (%p1102_p4), [#allocation10], 4294967264 }
 0x2cd PF: > { %s1695_s14 = sld [smem:[#allocation30_spill]]  ;;  %s1698_s27 = smov %s1413_s28 }
 0x2ce   : > { %s1696_s13 = sld [smem:[#allocation32_spill]]  ;;  %s1699_s28 = smov %s1417_s29 }
 0x2cf   : > { %s1697_s20 = sld [smem:[#allocation31_spill]]  ;;  %s1701_s30 = smov %s1425_s9 }
 0x2d3   : > { %s24_s10 = sadd.s32 1, %s1695_s14  }
 0x2d4   : > { %p21_p5 = scmp.ge.s32.totalorder %s24_s10, 5   ;;  %s1700_s29 = smov %s1696_s13 }
 0x2d5   : > { %s1702_s9 = smov %s1697_s20 }
 0x2d6   :  { %23 = sbr.rel (!%p21_p5) target bundleno = 11 (0xb), region = 135 }
 0x2db   :  { %789 = vsyncpa [#allocation9], 1 }
 0x2dc   :  { %791 = vsyncpa [#allocation9 + $0x1], 1 }
 0x2dd   :  { %792 = vsyncpa [#allocation12], 1 }
 0x2de   :  { %794 = vsyncpa [#allocation12 + $0x1], 1 }
 0x2df   :  { %795 = vsyncpa [#allocation15], 1 }
 0x2e0   :  { %796 = vsyncpa [#allocation10], 1 }
 0x2e1   :  { %798 = vsyncpa [#allocation10 + $0x1], 1 }
 0x2e2   :  { %799 = vsyncmov [#allocation7] }
 0x2e5   :  { %s800_s15 = vpop.sfrf %799 }
 0x2e6   :  { %p1001_p6 = scmp.ne.s32.totalorder %s800_s15, 0 }
 0x2e8   :  { %804 = shalt.err (%p1001_p6)  }

</bundles_post_ra>
